<compile_context>
chip_gen: v5e
topology: v5e:2x2
jax: 0.10.0
libtpu: 0.0.40
codegen_flags: <defaults>
</compile_context>

<pallas_src>
import math
import jax
import jax.numpy as jnp
from jax.experimental import pallas as pl
from jax.experimental.pallas import tpu as pltpu

_SUBLANE = 8     # sublane granule (second-to-last dim, f32)


def _round_up(x, m):
    return ((x + m - 1) // m) * m


def _make_dqn_kernel(num_layers):
    """Build the fused MLP kernel for one batch tile: (Linear+ReLU)^(L-1) -> Linear.

    refs = (x_ref, w0, b0, w1, b1, ..., o_ref).  Weights/biases are VMEM-resident
    (constant index_map); only the x / q tiles stream per grid step.  Matmuls run
    in the weights' storage dtype (f32 or bf16) with f32 accumulation; bias-add and
    ReLU are done in f32 (v5e-safe).
    """
    def kernel(*refs):
        x_ref = refs[0]
        o_ref = refs[-1]
        h = x_ref[...].astype(jnp.float32)
        for layer in range(num_layers):
            w = refs[1 + 2 * layer][...]
            b = refs[2 + 2 * layer][...]
            acc = jnp.dot(h.astype(w.dtype), w, preferred_element_type=jnp.float32)
            acc = acc + b.astype(jnp.float32)          # bias broadcast over rows
            if layer < num_layers - 1:
                acc = jnp.maximum(acc, 0.0)
            h = acc
        o_ref[...] = h.astype(o_ref.dtype)
    return kernel


def _pick_batch_semantics(grid_b):
    """Grid semantics for the batch axis.

    On v7x-class chips (2 TensorCores) CORE_PARALLEL shards the independent batch
    tiles across both cores (and doubles DMA issue capacity for this mem-bound
    kernel).  Elsewhere plain "parallel" is used (measured impact ~0 vs arbitrary,
    but harmless).
    """
    core_parallel = getattr(pltpu, "CORE_PARALLEL", None)
    try:
        kind = jax.devices()[0].device_kind.lower()
    except Exception:
        kind = ""
    if core_parallel is not None and grid_b >= 2 and "7" in kind:
        return (core_parallel,)
    return ("parallel",)


def dqn_forward(x, params, *, block_b=8192, dim_semantics=None):
    """Run the fused DQN forward pass via a single batch-tiled pallas_call.

    Args:
      x: [B, state_size] (or [state_size]) float states.  Streamed at natural width.
      params: list of (W [in, out], b [1, out]) tuples.  For the bf16 MXU fast path
        pass weights already cast to bf16 (one-time cast at setup); biases stay f32.
      block_b: max batch-tile height (rows per grid step).  Sweep 4096-16384 for
        large batches; streamed buffers stay tiny because x/q are unpadded.
      dim_semantics: override for the batch grid axis semantics (auto if None).
    Returns:
      [B, action_size] float32 Q-values.
    """
    x = jnp.asarray(x)
    if x.ndim == 1:
        x = x[None, :]
    B, state_size = x.shape
    if state_size != params[0][0].shape[0]:
        raise ValueError(
            f"Input state size {state_size} does not match expected size "
            f"{params[0][0].shape[0]}")
    action_size = params[-1][0].shape[1]
    num_layers = len(params)

    # Batch tiling: full-batch single block when small, else sublane-aligned tiles
    # with a masked ragged boundary block (no pad materialization).
    if B <= block_b:
        tb, grid_b = B, 1
    else:
        tb = _round_up(block_b, _SUBLANE)
        grid_b = pl.cdiv(B, tb)

    # ---- specs: stream x / q over the batch grid, keep params VMEM-resident ----
    in_specs = [pl.BlockSpec((tb, state_size), lambda i: (i, 0))]
    flat_args = [x]
    for (w, b) in params:
        w = jnp.asarray(w)
        fi, fo = w.shape
        b2 = jnp.asarray(b, dtype=jnp.float32).reshape(1, fo)
        in_specs.append(pl.BlockSpec((fi, fo), lambda i: (0, 0)))   # weight: resident
        in_specs.append(pl.BlockSpec((1, fo), lambda i: (0, 0)))    # bias:   resident
        flat_args.extend([w, b2])

    out_spec = pl.BlockSpec((tb, action_size), lambda i: (i, 0))

    if dim_semantics is None:
        dim_semantics = _pick_batch_semantics(grid_b)

    return pl.pallas_call(
        _make_dqn_kernel(num_layers),
        out_shape=jax.ShapeDtypeStruct((B, action_size), jnp.float32),
        grid=(grid_b,),
        in_specs=in_specs,
        out_specs=out_spec,
        compiler_params=pltpu.CompilerParams(
            dimension_semantics=dim_semantics,
            # raise v5e's 16 MiB scoped default; well within v7x's 64 MiB physical.
            vmem_limit_bytes=32 * 1024 * 1024,
        ),
    )(*flat_args)


# ----------------------------- parameters / reference -----------------------------

def _default_hidden_sizes(state_size):
    return [
        min(384, max(64, state_size * 2)),
        min(192, max(32, state_size)),
        min(96, max(16, state_size // 2)),
    ]


def _xavier_uniform(key, fan_in, fan_out):
    """Matches nn.init.xavier_uniform_ (gain=1); emitted directly in [in, out] layout."""
    bound = math.sqrt(6.0 / (fan_in + fan_out))
    return jax.random.uniform(key, (fan_in, fan_out), jnp.float32, -bound, bound)


def init_dqn_params(key, state_size, action_size, hidden_sizes=None):
    if hidden_sizes is None:
        hidden_sizes = _default_hidden_sizes(state_size)
    dims = [state_size] + list(hidden_sizes) + [action_size]
    params = []
    for i in range(len(dims) - 1):
        key, sub = jax.random.split(key)
        w = _xavier_uniform(sub, dims[i], dims[i + 1])
        b = jnp.zeros((1, dims[i + 1]), jnp.float32)   # nn.init.zeros_ on bias
        params.append((w, b))
    return params


def reference_forward(x, params):
    """Pure-JAX reference (mirrors the PyTorch forward)."""
    h = x
    for w, b in params[:-1]:
        h = jnp.maximum(h @ w + b, 0.0)
    w, b = params[-1]
    return h @ w + b


if __name__ == "__main__":
    state_size = 32
    action_size = 4
    batch = 2

    key = jax.random.PRNGKey(0)
    key_params, key_x, key_x2 = jax.random.split(key, 3)

    params = init_dqn_params(key_params, state_size, action_size)
    x = jax.random.normal(key_x, (batch, state_size), jnp.float32)

    q_ref = reference_forward(x, params)

    # f32 weights: single-block path, must match the pure-JAX reference tightly.
    q = jax.block_until_ready(dqn_forward(x, params))
    assert q.shape == (batch, action_size)
    assert jnp.allclose(q, q_ref, atol=1e-5, rtol=1e-5), "f32 mismatch vs reference"

    # Multi-tile + ragged-boundary path (grid > 1, B not a multiple of the tile).
    x_big = jax.random.normal(key_x2, (520, state_size), jnp.float32)
    q_big = jax.block_until_ready(dqn_forward(x_big, params, block_b=256))
    assert q_big.shape == (520, action_size)
    assert jnp.allclose(q_big, reference_forward(x_big, params),
                        atol=1e-5, rtol=1e-5), "tiled f32 mismatch vs reference"

    # bf16 weights (MXU fast path on v5e/v6e/v7x), f32 accumulate: loose tolerance.
    params_bf16 = [(w.astype(jnp.bfloat16), b) for (w, b) in params]
    q_bf16 = jax.block_until_ready(dqn_forward(x, params_bf16))
    assert jnp.allclose(q_bf16, q_ref, atol=1e-1, rtol=1e-1), "bf16 mismatch vs reference"

    print("KERNEL_OK")
</pallas_src>

<mosaic_0001>
module attributes {stable_mosaic.version = 11 : i64} {
  func.func @kernel(%arg0: i32, %arg1: memref<2x32xf32, #tpu.memory_space<vmem>>, %arg2: memref<32x64xf32, #tpu.memory_space<vmem>>, %arg3: memref<1x64xf32, #tpu.memory_space<vmem>>, %arg4: memref<64x32xf32, #tpu.memory_space<vmem>>, %arg5: memref<1x32xf32, #tpu.memory_space<vmem>>, %arg6: memref<32x16xf32, #tpu.memory_space<vmem>>, %arg7: memref<1x16xf32, #tpu.memory_space<vmem>>, %arg8: memref<16x4xf32, #tpu.memory_space<vmem>>, %arg9: memref<1x4xf32, #tpu.memory_space<vmem>>, %arg10: memref<2x4xf32, #tpu.memory_space<vmem>>) attributes {dimension_semantics = [#tpu.dimension_semantics<parallel>], iteration_bounds = array<i64: 1>, scalar_prefetch = 0 : i64, scratch_operands = 0 : i64, tpu.core_type = #tpu.core_type<tc>, window_params = [{transform_indices = @transform_0, window_bounds = array<i64: 2, 32>}, {pipeline_mode = #tpu.pipeline_mode<synchronous>, transform_indices = @transform_1, window_bounds = array<i64: 32, 64>}, {pipeline_mode = #tpu.pipeline_mode<synchronous>, transform_indices = @transform_2, window_bounds = array<i64: 1, 64>}, {pipeline_mode = #tpu.pipeline_mode<synchronous>, transform_indices = @transform_3, window_bounds = array<i64: 64, 32>}, {pipeline_mode = #tpu.pipeline_mode<synchronous>, transform_indices = @transform_4, window_bounds = array<i64: 1, 32>}, {pipeline_mode = #tpu.pipeline_mode<synchronous>, transform_indices = @transform_5, window_bounds = array<i64: 32, 16>}, {pipeline_mode = #tpu.pipeline_mode<synchronous>, transform_indices = @transform_6, window_bounds = array<i64: 1, 16>}, {pipeline_mode = #tpu.pipeline_mode<synchronous>, transform_indices = @transform_7, window_bounds = array<i64: 16, 4>}, {pipeline_mode = #tpu.pipeline_mode<synchronous>, transform_indices = @transform_8, window_bounds = array<i64: 1, 4>}, {transform_indices = @transform_9, window_bounds = array<i64: 2, 4>}]} {
    %c0 = arith.constant 0 : index
    %c0_0 = arith.constant 0 : index
    %0 = vector.load %arg1[%c0, %c0_0] : memref<2x32xf32, #tpu.memory_space<vmem>>, vector<2x32xf32>
    %c0_1 = arith.constant 0 : index
    %c0_2 = arith.constant 0 : index
    %1 = vector.load %arg2[%c0_1, %c0_2] : memref<32x64xf32, #tpu.memory_space<vmem>>, vector<32x64xf32>
    %c0_3 = arith.constant 0 : index
    %c0_4 = arith.constant 0 : index
    %2 = vector.load %arg3[%c0_3, %c0_4] : memref<1x64xf32, #tpu.memory_space<vmem>>, vector<1x64xf32>
    %cst = arith.constant dense<0.000000e+00> : vector<2x64xf32>
    %3 = tpu.matmul %0, %1, %cst {dimension_numbers = #tpu.dot_dimension_numbers<[1], [0], [0], [1], [0, 0, 1, 1], [], []>} : vector<2x32xf32>, vector<32x64xf32>, vector<2x64xf32> -> vector<2x64xf32>
    %4 = vector.broadcast %2 : vector<1x64xf32> to vector<2x64xf32>
    %5 = arith.addf %3, %4 : vector<2x64xf32>
    %cst_5 = arith.constant 0.000000e+00 : f32
    %6 = vector.broadcast %cst_5 : f32 to vector<2x64xf32>
    %7 = arith.maximumf %5, %6 : vector<2x64xf32>
    %c0_6 = arith.constant 0 : index
    %c0_7 = arith.constant 0 : index
    %8 = vector.load %arg4[%c0_6, %c0_7] : memref<64x32xf32, #tpu.memory_space<vmem>>, vector<64x32xf32>
    %c0_8 = arith.constant 0 : index
    %c0_9 = arith.constant 0 : index
    %9 = vector.load %arg5[%c0_8, %c0_9] : memref<1x32xf32, #tpu.memory_space<vmem>>, vector<1x32xf32>
    %cst_10 = arith.constant dense<0.000000e+00> : vector<2x32xf32>
    %10 = tpu.matmul %7, %8, %cst_10 {dimension_numbers = #tpu.dot_dimension_numbers<[1], [0], [0], [1], [0, 0, 1, 1], [], []>} : vector<2x64xf32>, vector<64x32xf32>, vector<2x32xf32> -> vector<2x32xf32>
    %11 = vector.broadcast %9 : vector<1x32xf32> to vector<2x32xf32>
    %12 = arith.addf %10, %11 : vector<2x32xf32>
    %cst_11 = arith.constant 0.000000e+00 : f32
    %13 = vector.broadcast %cst_11 : f32 to vector<2x32xf32>
    %14 = arith.maximumf %12, %13 : vector<2x32xf32>
    %c0_12 = arith.constant 0 : index
    %c0_13 = arith.constant 0 : index
    %15 = vector.load %arg6[%c0_12, %c0_13] : memref<32x16xf32, #tpu.memory_space<vmem>>, vector<32x16xf32>
    %c0_14 = arith.constant 0 : index
    %c0_15 = arith.constant 0 : index
    %16 = vector.load %arg7[%c0_14, %c0_15] : memref<1x16xf32, #tpu.memory_space<vmem>>, vector<1x16xf32>
    %cst_16 = arith.constant dense<0.000000e+00> : vector<2x16xf32>
    %17 = tpu.matmul %14, %15, %cst_16 {dimension_numbers = #tpu.dot_dimension_numbers<[1], [0], [0], [1], [0, 0, 1, 1], [], []>} : vector<2x32xf32>, vector<32x16xf32>, vector<2x16xf32> -> vector<2x16xf32>
    %18 = vector.broadcast %16 : vector<1x16xf32> to vector<2x16xf32>
    %19 = arith.addf %17, %18 : vector<2x16xf32>
    %cst_17 = arith.constant 0.000000e+00 : f32
    %20 = vector.broadcast %cst_17 : f32 to vector<2x16xf32>
    %21 = arith.maximumf %19, %20 : vector<2x16xf32>
    %c0_18 = arith.constant 0 : index
    %c0_19 = arith.constant 0 : index
    %22 = vector.load %arg8[%c0_18, %c0_19] : memref<16x4xf32, #tpu.memory_space<vmem>>, vector<16x4xf32>
    %c0_20 = arith.constant 0 : index
    %c0_21 = arith.constant 0 : index
    %23 = vector.load %arg9[%c0_20, %c0_21] : memref<1x4xf32, #tpu.memory_space<vmem>>, vector<1x4xf32>
    %cst_22 = arith.constant dense<0.000000e+00> : vector<2x4xf32>
    %24 = tpu.matmul %21, %22, %cst_22 {dimension_numbers = #tpu.dot_dimension_numbers<[1], [0], [0], [1], [0, 0, 1, 1], [], []>} : vector<2x16xf32>, vector<16x4xf32>, vector<2x4xf32> -> vector<2x4xf32>
    %25 = vector.broadcast %23 : vector<1x4xf32> to vector<2x4xf32>
    %26 = arith.addf %24, %25 : vector<2x4xf32>
    %c0_23 = arith.constant 0 : index
    %c0_24 = arith.constant 0 : index
    %27 = vector.load %arg10[%c0_23, %c0_24] : memref<2x4xf32, #tpu.memory_space<vmem>>, vector<2x4xf32>
    tpu.vector_store %arg10[%c0_23, %c0_24], %26 {strides = array<i32>} : memref<2x4xf32, #tpu.memory_space<vmem>>, vector<2x4xf32>,
    return
  }
  func.func @transform_0(%arg0: i32) -> (i32, i32) {
    %c0_i32 = arith.constant 0 : i32
    %c0_i32_0 = arith.constant 0 : i32
    return %arg0, %c0_i32 : i32, i32
  }
  func.func @transform_1(%arg0: i32) -> (i32, i32) {
    %c0_i32 = arith.constant 0 : i32
    %c0_i32_0 = arith.constant 0 : i32
    %c0_i32_1 = arith.constant 0 : i32
    return %c0_i32, %c0_i32_0 : i32, i32
  }
  func.func @transform_2(%arg0: i32) -> (i32, i32) {
    %c0_i32 = arith.constant 0 : i32
    %c0_i32_0 = arith.constant 0 : i32
    %c0_i32_1 = arith.constant 0 : i32
    return %c0_i32, %c0_i32_0 : i32, i32
  }
  func.func @transform_3(%arg0: i32) -> (i32, i32) {
    %c0_i32 = arith.constant 0 : i32
    %c0_i32_0 = arith.constant 0 : i32
    %c0_i32_1 = arith.constant 0 : i32
    return %c0_i32, %c0_i32_0 : i32, i32
  }
  func.func @transform_4(%arg0: i32) -> (i32, i32) {
    %c0_i32 = arith.constant 0 : i32
    %c0_i32_0 = arith.constant 0 : i32
    %c0_i32_1 = arith.constant 0 : i32
    return %c0_i32, %c0_i32_0 : i32, i32
  }
  func.func @transform_5(%arg0: i32) -> (i32, i32) {
    %c0_i32 = arith.constant 0 : i32
    %c0_i32_0 = arith.constant 0 : i32
    %c0_i32_1 = arith.constant 0 : i32
    return %c0_i32, %c0_i32_0 : i32, i32
  }
  func.func @transform_6(%arg0: i32) -> (i32, i32) {
    %c0_i32 = arith.constant 0 : i32
    %c0_i32_0 = arith.constant 0 : i32
    %c0_i32_1 = arith.constant 0 : i32
    return %c0_i32, %c0_i32_0 : i32, i32
  }
  func.func @transform_7(%arg0: i32) -> (i32, i32) {
    %c0_i32 = arith.constant 0 : i32
    %c0_i32_0 = arith.constant 0 : i32
    %c0_i32_1 = arith.constant 0 : i32
    return %c0_i32, %c0_i32_0 : i32, i32
  }
  func.func @transform_8(%arg0: i32) -> (i32, i32) {
    %c0_i32 = arith.constant 0 : i32
    %c0_i32_0 = arith.constant 0 : i32
    %c0_i32_1 = arith.constant 0 : i32
    return %c0_i32, %c0_i32_0 : i32, i32
  }
  func.func @transform_9(%arg0: i32) -> (i32, i32) {
    %c0_i32 = arith.constant 0 : i32
    %c0_i32_0 = arith.constant 0 : i32
    return %arg0, %c0_i32 : i32, i32
  }
}

</mosaic_0001>

<bundles_post_ra>
// kernel: tpu_custom_call.1
= control target key start
LH: loop header
LB: loop body
LE: loop exit
PB: predicated region body
PF: predicated region fallthrough
CT: control target
= control target key end

     0   :  { %vm42_vm0 = vcmask 261120   ;;  %s344_s0 = inlined_call_operand.vmem [shape: f32[2,32], index: 0, kind: input, shape index: {}]   ;;  %s345_s1 = inlined_call_operand.vmem [shape: f32[32,64], index: 1, kind: input, shape index: {}]   ;;  %s346_s2 = inlined_call_operand.vmem [shape: f32[1,64], index: 2, kind: input, shape index: {}]   ;;  %s347_s3 = inlined_call_operand.vmem [shape: f32[64,32], index: 3, kind: input, shape index: {}]   ;;  %s348_s4 = inlined_call_operand.vmem [shape: f32[1,32], index: 4, kind: input, shape index: {}]   ;;  %s349_s5 = inlined_call_operand.vmem [shape: f32[32,16], index: 5, kind: input, shape index: {}]   ;;  %s350_s6 = inlined_call_operand.vmem [shape: f32[1,16], index: 6, kind: input, shape index: {}]   ;;  %s351_s7 = inlined_call_operand.vmem [shape: f32[16,4], index: 7, kind: input, shape index: {}]   ;;  %s352_s8 = inlined_call_operand.vmem [shape: f32[1,4], index: 8, kind: input, shape index: {}]   ;;  %s353_s9 = inlined_call_operand.hbm [shape: f32[2,4], index: 9, kind: output, shape index: {}]  }
   0x1   :  { %v37_v0 = vld [vmem:[%s345_s1 + $0x18] sm:$0xff]  ;;  %v36_v1 = vld [vmem:[%s345_s1 + $0x10] sm:$0xff]  ;;  %v35_v3 = vld [vmem:[%s345_s1 + $0x8] sm:$0xff] }
   0x2   :  { %58 = vmatpush.msra.mxu0 %v37_v0  ;;  %v74_v2 = vld [vmem:[%s347_s3 + $0x38] sm:$0xff]  ;;  %v73_v4 = vld [vmem:[%s347_s3 + $0x30] sm:$0xff]  ;;  %v34_v5 = vld [vmem:[%s345_s1] sm:$0xff] }
   0x3   :  { %91 = vmatpush.msra.mxu1 %v74_v2  ;;  %v72_v6 = vld [vmem:[%s347_s3 + $0x28] sm:$0xff]  ;;  %v33_v7 = vld [vmem:[%s344_s0] sm:$0x3] }
   0x4   :  { %59 = vmatpush.msra.mxu0 %v36_v1  ;;  %v71_v8 = vld [vmem:[%s347_s3 + $0x20] sm:$0xff] }
   0x5   :  { %92 = vmatpush.msra.mxu1 %v73_v4 }
   0x6   :  { %60 = vmatpush.msra.mxu0 %v35_v3 }
   0x7   :  { %14 = vsyncpa [#allocation3], 0  ;;  %93 = vmatpush.msra.mxu1 %v72_v6  ;;  %v70_v9 = vld [vmem:[%s347_s3 + $0x18] sm:$0xff]  ;;  %v69_v10 = vld [vmem:[%s347_s3 + $0x10] sm:$0xff]  ;;  %vm79_vm1 = vcmask 523264   ;;  %vm142_vm2 = vcmask 130048  }
   0x8   :  { %61 = vmatpush.msra.mxu0 %v34_v5  ;;  %v68_v11 = vld [vmem:[%s347_s3 + $0x8] sm:$0xff]  ;;  %v67_v12 = vld [vmem:[%s347_s3] sm:$0xff]  ;;  %v107_v13 = vld [vmem:[%s349_s5 + $0x18] sm:$0xff]  ;;  %s219_s1 = smov [#allocation2]   ;;  %vm166_vm3 = vcmask 25600  }
   0x9   :  { %184 = vmatmul.msk.f32.vlgmr.msra.gmra.mxu0 %vm42_vm0, %v33_v7  ;;  %94 = vmatpush.msra.mxu1 %v71_v8  ;;  %v189_v14 = vld [vmem:[%s346_s2] ss:$0 sm:$0xff]  ;;  %v106_v18 = vld [vmem:[%s349_s5 + $0x10] sm:$0xff]  ;;  %v105_v19 = vld [vmem:[%s349_s5 + $0x8] sm:$0xff]  ;;  %s173_s28 = sshll.u32 %s219_s1, 4  ;;  %s174_s28 = int_to_ptr.vmem [resolvable:$true] %s173_s28 }
   0xa   :  { %127 = vmatpush.msra.mxu2 %v107_v13  ;;  %v104_v20 = vld [vmem:[%s349_s5] sm:$0xff]  ;;  %v137_v25 = vld [vmem:[%s351_s7 + $0x8] sm:$0xff] }
   0xb   :  { %95 = vmatpush.msra.mxu1 %v70_v9  ;;  %v190_v21 = vld [vmem:[%s348_s4] ss:$0 sm:$0xff]  ;;  %160 = vmatpush.msra.mxu3 %v137_v25 }
   0xc   :  { %128 = vmatpush.msra.mxu2 %v106_v18  ;;  %v136_v26 = vld [vmem:[%s351_s7] sm:$0xff]  ;;  %s175_s7 = sshll.u32 %s353_s9, 4  ;;  %s176_s7 = int_to_ptr.hbm [resolvable:$true] %s175_s7 }
   0xd   :  { %96 = vmatpush.msra.mxu1 %v69_v10  ;;  %161 = vmatpush.msra.mxu3 %v136_v26  ;;  %v191_v27 = vld [vmem:[%s350_s6] ss:$0 sm:$0xff] }
   0xe   :  { %129 = vmatpush.msra.mxu2 %v105_v19  ;;  %v192_v31 = vld [vmem:[%s352_s8] ss:$0 sm:$0xff] }
   0xf   :  { %97 = vmatpush.msra.mxu1 %v68_v11 }
  0x10   :  { %130 = vmatpush.msra.mxu2 %v104_v20 }
  0x11   :  { %98 = vmatpush.msra.mxu1 %v67_v12 }
  0x86   :  { %v63_v15 = vpop.f32.mrf.mxu0 }
  0x87   :  { %v64_v16 = vadd.f32 %v189_v14, %v63_v15 }
  0x89   :  { %v66_v17 = vmax.f32 %v64_v16, 0.0 }
  0x8b   :  { %185 = vmatmul.msk.f32.vlgmr.msra.gmra.mxu1 %vm79_vm1, %v66_v17 }
 0x108   :  { %v100_v22 = vpop.f32.mrf.mxu1 }
 0x109   :  { %v101_v23 = vadd.f32 %v190_v21, %v100_v22 }
 0x10b   :  { %v103_v24 = vmax.f32 %v101_v23, 0.0 }
 0x10d   :  { %186 = vmatmul.msk.f32.vlgmr.msra.gmra.mxu2 %vm42_vm0, %v103_v24 }
 0x190   :  { %v132_v28 = vpop.f32.mrf.mxu2 }
 0x191   :  { %v133_v29 = vadd.f32 %v191_v27, %v132_v28 }
 0x193   :  { %v135_v30 = vmax.f32 %v133_v29, 0.0 }
 0x195   :  { %187 = vmatmul.msk.f32.vlgmr.msra.gmra.mxu3 %vm142_vm2, %v135_v30 }
 0x218   :  { %v163_v32 = vpop.f32.mrf.mxu3 }
 0x219   :  { %v164_v33 = vadd.f32 %v192_v31, %v163_v32 }
 0x21b   :  { %167 = vst.msk [vmem:[#allocation2] sm:$0x3] %vm166_vm3, %v164_v33 }
 0x21c   :  { %178 = dma.vmem_to_hbm [thread:$0]  %s174_s28, 32, %s176_s7, [#allocation3]  }
 0x21d   :  { %217 = dma.done.wait [#allocation3], 32  }
 0x21e   :  { %218 = vsyncadd [#allocation3], 4294967264 }
 0x21f   :  { %183 = vsyncpa [#allocation3], 1 }

</bundles_post_ra>
